<compile_context>
chip_gen: v7x
topology: tpu7x:2x2x1
jax: 0.10.0
libtpu: 0.0.40
codegen_flags: <defaults>
</compile_context>

<pallas_src>
import functools
import math

import jax
import jax.numpy as jnp
from jax.experimental import pallas as pl
from jax.experimental.pallas import tpu as pltpu


def _flash_attn_kernel(xq_ref, k_ref, v_ref, wq_ref, bq_ref, o_ref,
                       m_sc, l_sc, acc_sc, q_sc, *, seq_len, kv_tile, need_mask):
    kv = pl.program_id(2)

    @pl.when(kv == 0)
    def _init():
        m_sc[...] = jnp.full(m_sc.shape, -jnp.inf, dtype=m_sc.dtype)
        l_sc[...] = jnp.zeros(l_sc.shape, dtype=l_sc.dtype)
        acc_sc[...] = jnp.zeros(acc_sc.shape, dtype=acc_sc.dtype)
        # Q projection hoisted out of the kv loop: done once per (batch, q-tile).
        # scale (1/sqrt(key_dim)) is already folded into wq_ref / bq_ref.
        xq = xq_ref[...]                                   # (Bb, Tq, D)
        Bb, Tq, D = xq.shape
        q = jnp.dot(xq.reshape(Bb * Tq, D), wq_ref[...],
                    preferred_element_type=jnp.float32)
        q = q + bq_ref[...].astype(jnp.float32)            # (Bb*Tq, P)
        q_sc[...] = q.reshape(Bb, Tq, -1).astype(q_sc.dtype)

    q = q_sc[...]                                          # (Bb, Tq, P)
    k = k_ref[...]                                         # (Bb, Tkv, P)
    v = v_ref[...]                                         # (Bb, Tkv, P)

    # Scores: contraction on the last dim (no explicit transpose / XLU work).
    s = jnp.einsum("bqp,bkp->bqk", q, k, preferred_element_type=jnp.float32)

    if need_mask:
        # Mask kv positions beyond the true sequence length (sequence padding).
        kv_pos = kv * kv_tile + jax.lax.broadcasted_iota(jnp.int32, s.shape, 2)
        s = jnp.where(kv_pos < seq_len, s, -jnp.inf)

    # Online softmax (state is lane-dense 2D: (Bb, Tq)).
    m_prev = m_sc[...]
    m_new = jnp.maximum(m_prev, s.max(axis=-1))
    alpha = jnp.exp(m_prev - m_new)
    p = jnp.exp(s - m_new[..., None])
    l_sc[...] = alpha * l_sc[...] + p.sum(axis=-1)
    acc_sc[...] = alpha[..., None] * acc_sc[...] + jnp.einsum(
        "bqk,bkp->bqp", p.astype(v.dtype), v, preferred_element_type=jnp.float32)
    m_sc[...] = m_new

    @pl.when(kv == pl.num_programs(2) - 1)
    def _finalize():
        # Exact divide: this runs once per output tile, so an approx reciprocal
        # saves nothing but costs accuracy.
        o_ref[...] = (acc_sc[...] / l_sc[...][:, :, None]).astype(o_ref.dtype)


def _round_up(x, m):
    return ((x + m - 1) // m) * m


def _pick_tile(s, target):
    """Sublane-aligned tile <= target (sequence is padded up to a multiple)."""
    t = min(int(target), _round_up(s, 8))
    return max(8, (t // 8) * 8)


def _pick_batch_block(b, target):
    t = max(1, min(b, int(target)))
    while b % t:
        t -= 1
    return t


def _vmem_limit_bytes():
    """Scoped-VMEM limit derived from the chip (v5e/v6e: 128 MiB, v7x: 64 MiB)."""
    cap = 64 * 1024 * 1024
    try:
        cap = int(getattr(pltpu.get_tpu_info(), "vmem_capacity_bytes", cap))
    except Exception:
        pass
    return max(32 * 1024 * 1024, min(cap * 3 // 4, 100 * 1024 * 1024))


def _vmem_estimate(bb, t, d, p, itemsize):
    est = 2 * bb * t * d * itemsize          # x query tiles (double-buffered)
    est += 2 * 2 * bb * t * p * itemsize     # K and V tiles (double-buffered)
    est += 2 * (d * p + p) * itemsize        # Wq / bq
    est += 2 * bb * t * p * itemsize         # output tiles
    est += bb * t * p * (4 + itemsize)       # acc + hoisted-Q scratch
    est += 2 * bb * t * 4                    # running max / denom
    est += 2 * bb * t * t * 4                # s / p intermediates
    return est


def transformer_attn_bsd(x, params, *, seq_tile=512, batch_block=4):
    """Batch-major core: x [B, S, D] -> [B, S, value_dim]. No HBM transposes."""
    wq, bq = params["wq"], params["bq"]
    wk, bk = params["wk"], params["bk"]
    wv, bv = params["wv"], params["bv"]

    B, S, D = x.shape
    Vq, Kd, Vd = wq.shape[1], wk.shape[1], wv.shape[1]
    assert Vq == Kd, "query/key widths must match for q @ k^T (as in the module)"

    dtype = x.dtype
    itemsize = jnp.dtype(dtype).itemsize
    P = _round_up(max(Vq, Kd, Vd), 128)
    scale = 1.0 / math.sqrt(Kd)               # module scales by sqrt(key.shape[-1])

    # Pad heads to a lane-dense P, cast to the activation dtype (bf16 callers
    # keep the fast MXU path), and fold the softmax scale into the Q projection.
    def _pad(w, b, s=1.0):
        n = w.shape[1]
        wp = jnp.zeros((D, P), dtype).at[:, :n].set((w * s).astype(dtype))
        bp = jnp.zeros((1, P), dtype).at[0, :n].set((b.reshape(-1) * s).astype(dtype))
        return wp, bp

    wq_p, bq_p = _pad(wq, bq, scale)
    wk_p, bk_p = _pad(wk, bk)
    wv_p, bv_p = _pad(wv, bv)

    # One-shot K / V projection (plain XLA matmul): removes the (S/Tq)-fold
    # redundant in-kernel K/V projection and the D-wide kv-input HBM restream.
    k_all = (jnp.einsum("bsd,dp->bsp", x, wk_p,
                        preferred_element_type=jnp.float32) + bk_p).astype(dtype)
    v_all = (jnp.einsum("bsd,dp->bsp", x, wv_p,
                        preferred_element_type=jnp.float32) + bv_p).astype(dtype)

    # Tile selection + per-chip VMEM budget.
    T = _pick_tile(S, seq_tile)
    Bb = _pick_batch_block(B, batch_block)
    vmem_limit = _vmem_limit_bytes()
    budget = int(vmem_limit * 0.8)
    while _vmem_estimate(Bb, T, D, P, itemsize) > budget:
        if Bb > 1:
            Bb = _pick_batch_block(B, Bb - 1)
        elif T > 8:
            T = max(8, ((T // 2) // 8) * 8)
        else:
            break

    S_pad = _round_up(S, T)
    q_tiles = S_pad // T
    # v7x shards the "parallel" grid axes over 2 TensorCores: keep >= 2 points.
    while Bb > 1 and (B // Bb) * q_tiles < 2:
        Bb = _pick_batch_block(B, Bb - 1)

    need_pad = S_pad != S
    if need_pad:
        pad = ((0, 0), (0, S_pad - S), (0, 0))
        x_in = jnp.pad(x, pad)
        k_all = jnp.pad(k_all, pad)
        v_all = jnp.pad(v_all, pad)
    else:
        x_in = x

    grid = (B // Bb, q_tiles, S_pad // T)
    cost = pl.CostEstimate(
        flops=2 * B * S_pad * D * P + 4 * B * S_pad * S_pad * P,
        transcendentals=B * S_pad * S_pad,
        bytes_accessed=B * S_pad * (D + 3 * P) * itemsize + (D * P + P) * itemsize,
    )

    kernel = functools.partial(_flash_attn_kernel,
                               seq_len=S, kv_tile=T, need_mask=need_pad)

    # NOTE: wq/bq have a constant block index, so Pallas only fetches them once;
    # single-buffering them (pipeline_mode) is a further v7x VMEM micro-opt.
    out_padded = pl.pallas_call(
        kernel,
        out_shape=jax.ShapeDtypeStruct((B, S_pad, P), dtype),
        grid_spec=pltpu.PrefetchScalarGridSpec(
            num_scalar_prefetch=0,
            grid=grid,
            in_specs=[
                pl.BlockSpec((Bb, T, D), lambda b, q, k_: (b, q, 0)),    # x (query tiles)
                pl.BlockSpec((Bb, T, P), lambda b, q, k_: (b, k_, 0)),   # K (precomputed)
                pl.BlockSpec((Bb, T, P), lambda b, q, k_: (b, k_, 0)),   # V (precomputed)
                pl.BlockSpec((D, P), lambda b, q, k_: (0, 0)),           # Wq (scale folded)
                pl.BlockSpec((1, P), lambda b, q, k_: (0, 0)),           # bq (scale folded)
            ],
            out_specs=pl.BlockSpec((Bb, T, P), lambda b, q, k_: (b, q, 0)),
            scratch_shapes=[
                pltpu.VMEM((Bb, T), jnp.float32),        # running max (lane-dense)
                pltpu.VMEM((Bb, T), jnp.float32),        # running denom (lane-dense)
                pltpu.VMEM((Bb, T, P), jnp.float32),     # output accumulator
                pltpu.VMEM((Bb, T, P), dtype),           # hoisted Q tile
            ],
        ),
        compiler_params=pltpu.CompilerParams(
            dimension_semantics=("parallel", "parallel", "arbitrary"),
            vmem_limit_bytes=vmem_limit,
        ),
        cost_estimate=cost,
    )(x_in, k_all, v_all, wq_p, bq_p)

    return out_padded[:, :S, :Vd]


def transformer_attn(seq, params):
    """PyTorch-parity wrapper: seq [S, B, D] -> [S, B, value_dim].

    The two transposes only exist to match the torch module's [Seq, Batch,
    Hidden] API; batch-major callers should use transformer_attn_bsd directly.
    """
    x = jnp.transpose(seq, (1, 0, 2))
    out = transformer_attn_bsd(x, params)
    return jnp.transpose(out, (1, 0, 2))


def init_params(key, dim_in, value_dim, key_dim):
    """Xavier-uniform weights ([in, out] layout), biases = 0.01 (as in the module)."""
    def xavier(k, fan_in, fan_out):
        bound = math.sqrt(6.0 / (fan_in + fan_out))
        return jax.random.uniform(k, (fan_in, fan_out), jnp.float32, -bound, bound)

    kq, kk, kv = jax.random.split(key, 3)
    return {
        "wq": xavier(kq, dim_in, value_dim),
        "bq": jnp.full((value_dim,), 0.01, jnp.float32),
        "wk": xavier(kk, dim_in, key_dim),
        "bk": jnp.full((key_dim,), 0.01, jnp.float32),
        "wv": xavier(kv, dim_in, value_dim),
        "bv": jnp.full((value_dim,), 0.01, jnp.float32),
    }


def _reference(seq, params):
    """Pure-JAX reference mirroring the PyTorch forward."""
    x = jnp.transpose(seq, (1, 0, 2))
    q = x @ params["wq"] + params["bq"]
    k = x @ params["wk"] + params["bk"]
    v = x @ params["wv"] + params["bv"]
    w = jnp.einsum("bqd,bkd->bqk", q, k) / math.sqrt(k.shape[-1])
    w = jax.nn.softmax(w, axis=-1)
    return jnp.transpose(jnp.einsum("bqk,bkd->bqd", w, v), (1, 0, 2))


if __name__ == "__main__":
    # Small shapes consistent with the module: seq [S, B, D].
    S, B, D = 8, 2, 32
    value_dim = key_dim = 32

    key = jax.random.PRNGKey(0)
    k_seq, k_par, k_seq2 = jax.random.split(key, 3)
    seq = jax.random.normal(k_seq, (S, B, D), jnp.float32)
    params = init_params(k_par, D, value_dim, key_dim)

    out = jax.block_until_ready(jax.jit(transformer_attn)(seq, params))
    ref = _reference(seq, params)
    assert out.shape == (S, B, value_dim)
    err = float(jnp.max(jnp.abs(out - ref)))
    assert err < 1e-4, f"mismatch vs reference: max|diff|={err}"

    # Second case exercises the sequence-padding / kv-masking path (S % 8 != 0).
    S2, B2 = 10, 3
    seq2 = jax.random.normal(k_seq2, (S2, B2, D), jnp.float32)
    out2 = jax.block_until_ready(jax.jit(transformer_attn)(seq2, params))
    ref2 = _reference(seq2, params)
    assert out2.shape == (S2, B2, value_dim)
    err2 = float(jnp.max(jnp.abs(out2 - ref2)))
    assert err2 < 1e-4, f"mismatch vs reference (padded case): max|diff|={err2}"

    print("KERNEL_OK")
</pallas_src>

<mosaic_0001>
module attributes {stable_mosaic.version = 11 : i64} {
  func.func @_flash_attn_kernel(%arg0: i32, %arg1: i32, %arg2: i32, %arg3: memref<1x8x32xf32, #tpu.memory_space<vmem>>, %arg4: memref<1x8x128xf32, #tpu.memory_space<vmem>>, %arg5: memref<1x8x128xf32, #tpu.memory_space<vmem>>, %arg6: memref<32x128xf32, #tpu.memory_space<vmem>>, %arg7: memref<1x128xf32, #tpu.memory_space<vmem>>, %arg8: memref<1x8x128xf32, #tpu.memory_space<vmem>>, %arg9: memref<1x8xf32, #tpu.memory_space<vmem>>, %arg10: memref<1x8xf32, #tpu.memory_space<vmem>>, %arg11: memref<1x8x128xf32, #tpu.memory_space<vmem>>, %arg12: memref<1x8x128xf32, #tpu.memory_space<vmem>>) attributes {dimension_semantics = [#tpu.dimension_semantics<parallel>, #tpu.dimension_semantics<parallel>, #tpu.dimension_semantics<arbitrary>], iteration_bounds = array<i64: 2, 1, 1>, scalar_prefetch = 0 : i64, scratch_operands = 4 : i64, tpu.core_type = #tpu.core_type<tc>, window_params = [{transform_indices = @transform_0, window_bounds = array<i64: 1, 8, 32>}, {transform_indices = @transform_1, window_bounds = array<i64: 1, 8, 128>}, {transform_indices = @transform_2, window_bounds = array<i64: 1, 8, 128>}, {pipeline_mode = #tpu.pipeline_mode<synchronous>, transform_indices = @transform_3, window_bounds = array<i64: 32, 128>}, {pipeline_mode = #tpu.pipeline_mode<synchronous>, transform_indices = @transform_4, window_bounds = array<i64: 1, 128>}, {transform_indices = @transform_5, window_bounds = array<i64: 1, 8, 128>}]} {
    %c0_i32 = arith.constant 0 : i32
    %0 = arith.cmpi eq, %arg2, %c0_i32 : i32
    %1 = arith.extui %0 : i1 to i32
    %c0_i32_0 = arith.constant 0 : i32
    %2 = arith.cmpi ne, %1, %c0_i32_0 : i32
    scf.if %2 {
      %cst_28 = arith.constant 0xFF800000 : f32
      %32 = vector.broadcast %cst_28 : f32 to vector<1x8xf32>
      %c0_29 = arith.constant 0 : index
      %c0_30 = arith.constant 0 : index
      %33 = vector.load %arg9[%c0_29, %c0_30] : memref<1x8xf32, #tpu.memory_space<vmem>>, vector<1x8xf32>
      tpu.vector_store %arg9[%c0_29, %c0_30], %32 {strides = array<i32>} : memref<1x8xf32, #tpu.memory_space<vmem>>, vector<1x8xf32>,
      %cst_31 = arith.constant 0.000000e+00 : f32
      %34 = vector.broadcast %cst_31 : f32 to vector<1x8xf32>
      %c0_32 = arith.constant 0 : index
      %c0_33 = arith.constant 0 : index
      %35 = vector.load %arg10[%c0_32, %c0_33] : memref<1x8xf32, #tpu.memory_space<vmem>>, vector<1x8xf32>
      tpu.vector_store %arg10[%c0_32, %c0_33], %34 {strides = array<i32>} : memref<1x8xf32, #tpu.memory_space<vmem>>, vector<1x8xf32>,
      %cst_34 = arith.constant 0.000000e+00 : f32
      %36 = vector.broadcast %cst_34 : f32 to vector<1x8x128xf32>
      %c0_35 = arith.constant 0 : index
      %c0_36 = arith.constant 0 : index
      %c0_37 = arith.constant 0 : index
      %37 = vector.load %arg11[%c0_35, %c0_36, %c0_37] : memref<1x8x128xf32, #tpu.memory_space<vmem>>, vector<1x8x128xf32>
      tpu.vector_store %arg11[%c0_35, %c0_36, %c0_37], %36 {strides = array<i32>} : memref<1x8x128xf32, #tpu.memory_space<vmem>>, vector<1x8x128xf32>,
      %c0_38 = arith.constant 0 : index
      %c0_39 = arith.constant 0 : index
      %c0_40 = arith.constant 0 : index
      %38 = vector.load %arg3[%c0_38, %c0_39, %c0_40] : memref<1x8x32xf32, #tpu.memory_space<vmem>>, vector<1x8x32xf32>
      %39 = vector.shape_cast %38 : vector<1x8x32xf32> to vector<8x32xf32>
      %c0_41 = arith.constant 0 : index
      %c0_42 = arith.constant 0 : index
      %40 = vector.load %arg6[%c0_41, %c0_42] : memref<32x128xf32, #tpu.memory_space<vmem>>, vector<32x128xf32>
      %cst_43 = arith.constant dense<0.000000e+00> : vector<8x128xf32>
      %41 = tpu.matmul %39, %40, %cst_43 {dimension_numbers = #tpu.dot_dimension_numbers<[1], [0], [0], [1], [0, 0, 1, 1], [], []>} : vector<8x32xf32>, vector<32x128xf32>, vector<8x128xf32> -> vector<8x128xf32>
      %c0_44 = arith.constant 0 : index
      %c0_45 = arith.constant 0 : index
      %42 = vector.load %arg7[%c0_44, %c0_45] : memref<1x128xf32, #tpu.memory_space<vmem>>, vector<1x128xf32>
      %43 = vector.broadcast %42 : vector<1x128xf32> to vector<8x128xf32>
      %44 = arith.addf %41, %43 : vector<8x128xf32>
      %45 = vector.shape_cast %44 : vector<8x128xf32> to vector<1x8x128xf32>
      %c0_46 = arith.constant 0 : index
      %c0_47 = arith.constant 0 : index
      %c0_48 = arith.constant 0 : index
      %46 = vector.load %arg12[%c0_46, %c0_47, %c0_48] : memref<1x8x128xf32, #tpu.memory_space<vmem>>, vector<1x8x128xf32>
      tpu.vector_store %arg12[%c0_46, %c0_47, %c0_48], %45 {strides = array<i32>} : memref<1x8x128xf32, #tpu.memory_space<vmem>>, vector<1x8x128xf32>,
    } else {
    }
    %c0 = arith.constant 0 : index
    %c0_1 = arith.constant 0 : index
    %c0_2 = arith.constant 0 : index
    %3 = vector.load %arg12[%c0, %c0_1, %c0_2] : memref<1x8x128xf32, #tpu.memory_space<vmem>>, vector<1x8x128xf32>
    %c0_3 = arith.constant 0 : index
    %c0_4 = arith.constant 0 : index
    %c0_5 = arith.constant 0 : index
    %4 = vector.load %arg4[%c0_3, %c0_4, %c0_5] : memref<1x8x128xf32, #tpu.memory_space<vmem>>, vector<1x8x128xf32>
    %c0_6 = arith.constant 0 : index
    %c0_7 = arith.constant 0 : index
    %c0_8 = arith.constant 0 : index
    %5 = vector.load %arg5[%c0_6, %c0_7, %c0_8] : memref<1x8x128xf32, #tpu.memory_space<vmem>>, vector<1x8x128xf32>
    "tpu.trace_start"() <{level = 10 : i32, message = "bqp,bkp->bqk"}> : () -> ()
    %cst = arith.constant dense<0.000000e+00> : vector<1x8x8xf32>
    %6 = tpu.matmul %3, %4, %cst {dimension_numbers = #tpu.dot_dimension_numbers<[2], [2], [1], [1], [0, 0, 0, 1, 1, 1], [0], [0]>} : vector<1x8x128xf32>, vector<1x8x128xf32>, vector<1x8x8xf32> -> vector<1x8x8xf32>
    "tpu.trace_stop"() : () -> ()
    %c0_9 = arith.constant 0 : index
    %c0_10 = arith.constant 0 : index
    %7 = vector.load %arg9[%c0_9, %c0_10] : memref<1x8xf32, #tpu.memory_space<vmem>>, vector<1x8xf32>
    %cst_11 = arith.constant dense<0xFF800000> : vector<1x8xf32>
    %8 = vector.multi_reduction <maximumf>, %6, %cst_11 [2] : vector<1x8x8xf32> to vector<1x8xf32>
    %9 = arith.maximumf %7, %8 : vector<1x8xf32>
    %10 = arith.subf %7, %9 : vector<1x8xf32>
    %11 = math.exp %10 : vector<1x8xf32>
    %12 = vector.shape_cast %9 : vector<1x8xf32> to vector<1x8x1xf32>
    %13 = vector.broadcast %12 : vector<1x8x1xf32> to vector<1x8x8xf32>
    %14 = arith.subf %6, %13 : vector<1x8x8xf32>
    %15 = math.exp %14 : vector<1x8x8xf32>
    %c0_12 = arith.constant 0 : index
    %c0_13 = arith.constant 0 : index
    %16 = vector.load %arg10[%c0_12, %c0_13] : memref<1x8xf32, #tpu.memory_space<vmem>>, vector<1x8xf32>
    %17 = arith.mulf %11, %16 : vector<1x8xf32>
    %cst_14 = arith.constant dense<0.000000e+00> : vector<1x8xf32>
    %18 = vector.multi_reduction <add>, %15, %cst_14 [2] : vector<1x8x8xf32> to vector<1x8xf32>
    %19 = arith.addf %17, %18 : vector<1x8xf32>
    %c0_15 = arith.constant 0 : index
    %c0_16 = arith.constant 0 : index
    %20 = vector.load %arg10[%c0_15, %c0_16] : memref<1x8xf32, #tpu.memory_space<vmem>>, vector<1x8xf32>
    tpu.vector_store %arg10[%c0_15, %c0_16], %19 {strides = array<i32>} : memref<1x8xf32, #tpu.memory_space<vmem>>, vector<1x8xf32>,
    %21 = vector.shape_cast %11 : vector<1x8xf32> to vector<1x8x1xf32>
    %c0_17 = arith.constant 0 : index
    %c0_18 = arith.constant 0 : index
    %c0_19 = arith.constant 0 : index
    %22 = vector.load %arg11[%c0_17, %c0_18, %c0_19] : memref<1x8x128xf32, #tpu.memory_space<vmem>>, vector<1x8x128xf32>
    %23 = vector.broadcast %21 : vector<1x8x1xf32> to vector<1x8x128xf32>
    %24 = arith.mulf %23, %22 : vector<1x8x128xf32>
    "tpu.trace_start"() <{level = 10 : i32, message = "bqk,bkp->bqp"}> : () -> ()
    %cst_20 = arith.constant dense<0.000000e+00> : vector<1x8x128xf32>
    %25 = tpu.matmul %15, %5, %cst_20 {dimension_numbers = #tpu.dot_dimension_numbers<[2], [1], [1], [2], [0, 0, 0, 1, 1, 2], [0], [0]>} : vector<1x8x8xf32>, vector<1x8x128xf32>, vector<1x8x128xf32> -> vector<1x8x128xf32>
    "tpu.trace_stop"() : () -> ()
    %26 = arith.addf %24, %25 : vector<1x8x128xf32>
    %c0_21 = arith.constant 0 : index
    %c0_22 = arith.constant 0 : index
    %c0_23 = arith.constant 0 : index
    %27 = vector.load %arg11[%c0_21, %c0_22, %c0_23] : memref<1x8x128xf32, #tpu.memory_space<vmem>>, vector<1x8x128xf32>
    tpu.vector_store %arg11[%c0_21, %c0_22, %c0_23], %26 {strides = array<i32>} : memref<1x8x128xf32, #tpu.memory_space<vmem>>, vector<1x8x128xf32>,
    %c0_24 = arith.constant 0 : index
    %c0_25 = arith.constant 0 : index
    %28 = vector.load %arg9[%c0_24, %c0_25] : memref<1x8xf32, #tpu.memory_space<vmem>>, vector<1x8xf32>
    tpu.vector_store %arg9[%c0_24, %c0_25], %9 {strides = array<i32>} : memref<1x8xf32, #tpu.memory_space<vmem>>, vector<1x8xf32>,
    %c0_i32_26 = arith.constant 0 : i32
    %29 = arith.cmpi eq, %arg2, %c0_i32_26 : i32
    %30 = arith.extui %29 : i1 to i32
    %c0_i32_27 = arith.constant 0 : i32
    %31 = arith.cmpi ne, %30, %c0_i32_27 : i32
    scf.if %31 {
      %c0_28 = arith.constant 0 : index
      %c0_29 = arith.constant 0 : index
      %c0_30 = arith.constant 0 : index
      %32 = vector.load %arg11[%c0_28, %c0_29, %c0_30] : memref<1x8x128xf32, #tpu.memory_space<vmem>>, vector<1x8x128xf32>
      %c0_31 = arith.constant 0 : index
      %c0_32 = arith.constant 0 : index
      %33 = vector.load %arg10[%c0_31, %c0_32] : memref<1x8xf32, #tpu.memory_space<vmem>>, vector<1x8xf32>
      %34 = vector.shape_cast %33 : vector<1x8xf32> to vector<1x8x1xf32>
      %35 = vector.broadcast %34 : vector<1x8x1xf32> to vector<1x8x128xf32>
      %36 = arith.divf %32, %35 : vector<1x8x128xf32>
      %c0_33 = arith.constant 0 : index
      %c0_34 = arith.constant 0 : index
      %c0_35 = arith.constant 0 : index
      %37 = vector.load %arg8[%c0_33, %c0_34, %c0_35] : memref<1x8x128xf32, #tpu.memory_space<vmem>>, vector<1x8x128xf32>
      tpu.vector_store %arg8[%c0_33, %c0_34, %c0_35], %36 {strides = array<i32>} : memref<1x8x128xf32, #tpu.memory_space<vmem>>, vector<1x8x128xf32>,
    } else {
    }
    return
  }
  func.func @transform_0(%arg0: i32, %arg1: i32, %arg2: i32) -> (i32, i32, i32) {
    %c0_i32 = arith.constant 0 : i32
    %c0_i32_0 = arith.constant 0 : i32
    return %arg0, %arg1, %c0_i32 : i32, i32, i32
  }
  func.func @transform_1(%arg0: i32, %arg1: i32, %arg2: i32) -> (i32, i32, i32) {
    %c0_i32 = arith.constant 0 : i32
    %c0_i32_0 = arith.constant 0 : i32
    return %arg0, %arg2, %c0_i32 : i32, i32, i32
  }
  func.func @transform_2(%arg0: i32, %arg1: i32, %arg2: i32) -> (i32, i32, i32) {
    %c0_i32 = arith.constant 0 : i32
    %c0_i32_0 = arith.constant 0 : i32
    return %arg0, %arg2, %c0_i32 : i32, i32, i32
  }
  func.func @transform_3(%arg0: i32, %arg1: i32, %arg2: i32) -> (i32, i32) {
    %c0_i32 = arith.constant 0 : i32
    %c0_i32_0 = arith.constant 0 : i32
    %c0_i32_1 = arith.constant 0 : i32
    return %c0_i32, %c0_i32_0 : i32, i32
  }
  func.func @transform_4(%arg0: i32, %arg1: i32, %arg2: i32) -> (i32, i32) {
    %c0_i32 = arith.constant 0 : i32
    %c0_i32_0 = arith.constant 0 : i32
    %c0_i32_1 = arith.constant 0 : i32
    return %c0_i32, %c0_i32_0 : i32, i32
  }
  func.func @transform_5(%arg0: i32, %arg1: i32, %arg2: i32) -> (i32, i32, i32) {
    %c0_i32 = arith.constant 0 : i32
    %c0_i32_0 = arith.constant 0 : i32
    return %arg0, %arg1, %c0_i32 : i32, i32, i32
  }
}

</mosaic_0001>

<bundles_post_ra>
// kernel: transformer_attn.1
= control target key start
LH: loop header
LB: loop body
LE: loop exit
PB: predicated region body
PF: predicated region fallthrough
CT: control target
= control target key end

     0   :  { %s1075_s18 = smov 0   ;;  %s1077_s19 = smov 0   ;;  %s1195_s0 = inlined_call_operand.vmem [shape: f32[2,8,32], index: 0, kind: input, shape index: {}]   ;;  %s1196_s1 = inlined_call_operand.vmem [shape: f32[2,8,128], index: 1, kind: input, shape index: {}]   ;;  %s1197_s2 = inlined_call_operand.vmem [shape: f32[2,8,128], index: 2, kind: input, shape index: {}]   ;;  %s1198_s3 = inlined_call_operand.vmem [shape: f32[32,128], index: 3, kind: input, shape index: {}]   ;;  %s1199_s4 = inlined_call_operand.vmem [shape: f32[1,128], index: 4, kind: input, shape index: {}]   ;;  %s1200_s5 = inlined_call_operand.vmem [shape: f32[2,8,128], index: 5, kind: output, shape index: {}]  }
   0x1   :  { %s1079_s20 = smov 0  }
   0x2 LB: > { %s34_s21 = sadd.s32 1, %s1033_s19  ;;  %p930_p0 = scmp.ge.s32.totalorder %s1037_s20, 1  ;;  %s1037_s20 = sphi %s1079_s20, %s15_s20   ;;  %s1033_s19 = sphi %s1077_s19, %s1202_s19   ;;  %s1029_s18 = sphi %s1075_s18, %s1201_s18  }
   0x3   : > { %p36_p1 = scmp.ge.s32.totalorder %s34_s21, 2  ;;  %p240_p2 = scmp.lt.s32.totalorder %s1037_s20, 3 }
   0x5   : > { %s1204_s21 = smov (%p36_p1, %s34_s21), 0  ;;  %p241_p3 = pnand %p930_p0, %p240_p2 }
   0x6   : > { %v323_v0 = vld [vmem:[%s1198_s3] sm:$0xff] (!%p241_p3)  ;;  %v324_v1 = vld [vmem:[%s1198_s3 + $0x8] sm:$0xff] (!%p241_p3)  ;;  %v325_v2 = vld [vmem:[%s1198_s3 + $0x10] sm:$0xff] (!%p241_p3)  ;;  %v1039_v3 = vmov (!%p241_p3), 0.0|0.0   ;;  %vm1040_vm0 = vmmov (!%p241_p3), 0   ;;  %v1041_v6 = vmov (!%p241_p3), 0.0   ;;  %v488_v18 = vlaneseq (!%p241_p3) }
   0x7   : > { %244 = sbr.rel (%p241_p3) target bundleno = 1297 (0x511), region = 40  ;;  %971 = vmatprep.subr.bf16.mxu0 (!%p241_p3), %v1039_v3  ;;  %v972_v4 = vpack.c.bf16 (!%p241_p3), %v324_v1, %v323_v0  ;;  %v326_v5 = vld [vmem:[%s1198_s3 + $0x18] sm:$0xff] (!%p241_p3)  ;;  %958 = vmatprep.mubr.msk.f32.mxu0 (!%p241_p3), %vm1040_vm0, %v1041_v6  ;;  %p286_p4 = scmp.lt.s32.totalorder (!%p241_p3), %s1029_s18, 1  ;;  %vm334_vm1 = vcmask (!%p241_p3), 261120   ;;  %v935_v10 = vld [vmem:[%s1199_s4] ss:$0 sm:$0xff] (!%p241_p3) }
   0x8   : > { %961 = vmatprep.subr.mxu1 (!%p241_p3), %v1041_v6  ;;  %963 = vmatprep.mubr.msk.f32.mxu1 (!%p241_p3), %vm1040_vm0, %v1041_v6  ;;  %v975_v7 = vpack.c.bf16 (!%p241_p3), %v326_v5, %v325_v2  ;;  %vm483_vm2 = vcmask (!%p241_p3), 64512   ;;  %v1042_v17 = vmov (!%p241_p3), 0   ;;  %v1130_v19 = vshrl.u32 (!%p241_p3), %v488_v18, 7 }
   0x9   : > { %973 = vmatpush3.bf16.msra.mxu0 (!%p241_p3), %v972_v4  ;;  %1007 = vset.pattern.permute.xlu0 (!%p241_p3), %v1042_v17  ;;  %v573_v20 = vand.u32 (!%p241_p3), 127, %v488_v18  ;;  %v1043_v22 = vmov (!%p241_p3), 1966171168   ;;  %vm318_vm3 = vcmask (!%p241_p3), 57344   ;;  %v1044_v56 = vmov (!%p241_p3), -inf  }
   0xa   : > { %974 = vmatprep.subr.bf16.mxu0 (!%p241_p3), %v1039_v3  ;;  %1008 = vset.pattern.permute.xlu1 (!%p241_p3), %v1042_v17  ;;  %v525_v23 = vunpack.c.l.s4 (!%p241_p3), %v1043_v22  ;;  %v1136_v25 = vsub.s32 (!%p241_p3), 0, %v1130_v19  ;;  %v494_v26 = vsub.s32 (!%p241_p3), 1, %v1130_v19  ;;  %v498_v27 = vsub.s32 (!%p241_p3), 2, %v1130_v19  ;;  %319 = vst.msk [vmem:[#allocation2] sm:$0x1] (!%p241_p3), %vm318_vm3, %v1044_v56 }
   0xb   : > { %v1133_v21 = vsub.s32 (!%p241_p3), %v573_v20, %v1130_v19  ;;  %v502_v28 = vsub.s32 (!%p241_p3), 3, %v1130_v19  ;;  %v506_v29 = vsub.s32 (!%p241_p3), 4, %v1130_v19  ;;  %v510_v30 = vsub.s32 (!%p241_p3), 5, %v1130_v19  ;;  %320 = vst.msk [vmem:[#allocation3] sm:$0x1] (!%p241_p3), %vm318_vm3, %v1041_v6 }
   0xc   : > { %v526_v24 = vunpack.c.0.s8 (!%p241_p3), %v525_v23  ;;  %v514_v31 = vsub.s32 (!%p241_p3), 6, %v1130_v19  ;;  %v518_v32 = vsub.s32 (!%p241_p3), 7, %v1130_v19 }
   0xd   : > { %976 = vmatpush3.bf16.msra.mxu0 (!%p241_p3), %v975_v7 }
   0xe   : > { %s1206_s18 = smov (!%p286_p4, %s1029_s18), 1  ;;  %v1146_v34 = vsub.s32 %v526_v24, %v1130_v19 }
   0xf   : > { %s1110_s30 = sshll.u32 %s1206_s18, 3 }
  0x10   : > { %s292_s8 = scalar_lea.vmem %s1195_s0, %s1110_s30  ;;  %s299_s11 = scalar_lea.vmem %s1196_s1, %s1110_s30 }
  0x11   : > { %v322_v8 = vld [vmem:[%s292_s8] sm:$0xff]  ;;  %s306_s16 = scalar_lea.vmem %s1197_s2, %s1110_s30  ;;  %s313_s22 = scalar_lea.vmem %s1200_s5, %s1110_s30 }
  0x12   : > { %959 = vmatmul.mubr.msk.f32.vlgmr.msra.gmra.mrb[0].mxu0 %vm334_vm1, %v322_v8  ;;  %v410_v9 = vld [vmem:[%s299_s11] sm:$0xff] }
  0x13   : > { %962 = vmatpush3.xpose.msra.mxu1 %v410_v9  ;;  %v411_v60 = vld [vmem:[%s306_s16] sm:$0xff] }
  0x14   : > { %966 = vmatprep.subr.mxu1 %v1041_v6  ;;  %v482_v61 = vld [vmem:[#allocation2] sm:$0x1] }
  0xe5   : > { %v404_v11 = vpop.f32.mrb[0].mxu0 }
  0xe6   : > { %v405_v12 = vadd.f32 %v935_v10, %v404_v11  ;;  %v960_v13 = vpop.f32.mrb[1].mxu0 }
  0xe8   : > { %964 = vmatmul.mubr.f32.vlgmr.msra.gmra.mrb[0].mxu1 %v405_v12 }
  0xe9   : > { %968 = vmatprep.mubr.msk.f32.mxu1 %vm1040_vm0, %v1041_v6  ;;  %967 = vmatpush3.msra.mxu1 %v411_v60 }
 0x1bb   : > { %v1126_v14 = vpop.f32.mrb[0].mxu1 }
 0x1bc   : > { %v965_v15 = vpop.f32.mrb[1].mxu1  ;;  %v484_v16 = vsel %vm483_vm2, %v1126_v14, -inf }
 0x1bd   : > { %485 = vmax.xlane.f32.xlu0 %v484_v16 }
 0x24a   : > { %v486_v33 = vpop.xlane.xlu0 %485 }
 0x24b   : > { %v491_v35 = vrot.slane %v486_v33, %v1136_v25  ;;  %v495_v36 = vrot.slane %v486_v33, %v494_v26  ;;  %v499_v37 = vrot.slane %v486_v33, %v498_v27  ;;  %v503_v38 = vrot.slane %v486_v33, %v502_v28 }
 0x24c   : > { %v507_v39 = vrot.slane %v486_v33, %v506_v29  ;;  %v511_v40 = vrot.slane %v486_v33, %v510_v30  ;;  %v515_v41 = vrot.slane %v486_v33, %v514_v31  ;;  %v519_v42 = vrot.slane %v486_v33, %v518_v32 }
 0x24d   : > { %v520_v43 = vcombine.low %v491_v35, %v495_v36  ;;  %v521_v44 = vcombine.low %v499_v37, %v503_v38  ;;  %v607_v38 = vld [vmem:[#allocation3] sm:$0x1] }
 0x24e   : > { %v522_v45 = vcombine.low %v507_v39, %v511_v40  ;;  %v523_v46 = vcombine.low %v515_v41, %v519_v42 }
 0x24f   : > { %v530_v47 = vrot.slane %v520_v43, %v1146_v34  ;;  %v537_v48 = vrot.slane %v521_v44, %v1146_v34 }
 0x250   : > { %v544_v49 = vrot.slane %v522_v45, %v1146_v34  ;;  %v551_v50 = vrot.slane %v523_v46, %v1146_v34 }
 0x251   : > { %v552_v51 = vcombine.low %v530_v47, %v537_v48 }
 0x252   : > { %v553_v52 = vcombine.low %v544_v49, %v551_v50 }
 0x253   : > { %v560_v53 = vrot.slane %v552_v51, %v1146_v34 }
 0x254   : > { %v567_v54 = vrot.slane %v553_v52, %v1146_v34 }
 0x256   : > { %v568_v55 = vcombine.low %v560_v53, %v567_v54 }
 0x258   : > { %570 = vperm.xlu0 %1007, %v568_v55  }
 0x2d7   : > { %v571_v57 = vpop.permute.xlu0 %570 }
 0x2d8   : > { %v577_v58 = vrot.slane %v571_v57, %v1133_v21 }
 0x2da   : > { %v584_v59 = vrot.slane %v577_v58, %v1146_v34 }
 0x2dc   : > { %v591_v62 = vrot.slane %v584_v59, %v1146_v34 }
 0x2de   : > { %v593_v63 = vmax.f32 %v482_v61, %v591_v62 }
 0x2e0   : > { %v600_v0 = vrot.slane %v593_v63, %v1136_v25  ;;  %803 = vst.msk [vmem:[#allocation2] sm:$0x1] %vm318_vm3, %v593_v63  ;;  %v594_v1 = vsub.f32 %v482_v61, %v593_v63 }
 0x2e2   : > { %602 = vbcast.lane.b32.xlu1 %v600_v0, 256 }
 0x354   : > { %v603_v2 = vpop.permute.xlu1 %602 }
 0x355   : > { %v604_v3 = vsub.f32 %v1126_v14, %v603_v2 }
 0x357   : > { %v605_v4 = vmul.f32 1.442695, %v604_v3 }
 0x359   : > { %1009 = vpow2.f32 %v605_v4 }
 0x363   : > { %v1010_v5 = vpop.eup %1009 }
 0x364   : > { %969 = vmatmul.mubr.msk.f32.vlgmr.msra.gmra.mrb[2].mxu1 %vm483_vm2, %v1010_v5  ;;  %v609_v6 = vsel %vm483_vm2, %v1010_v5, 0.0 }
 0x365   : > { %610 = vadd.xlane.f32.xlu1 %v609_v6 }
 0x3f2   : > { %v611_v7 = vpop.xlane.xlu1 %610 }
 0x3f3   : > { %v616_v8 = vrot.slane %v611_v7, %v1136_v25  ;;  %v620_v9 = vrot.slane %v611_v7, %v494_v26  ;;  %v624_v10 = vrot.slane %v611_v7, %v498_v27  ;;  %v628_v11 = vrot.slane %v611_v7, %v502_v28 }
 0x3f4   : > { %v632_v12 = vrot.slane %v611_v7, %v506_v29  ;;  %v636_v13 = vrot.slane %v611_v7, %v510_v30  ;;  %v640_v15 = vrot.slane %v611_v7, %v514_v31  ;;  %v644_v16 = vrot.slane %v611_v7, %v518_v32 }
 0x3f5   : > { %v645_v17 = vcombine.low %v616_v8, %v620_v9  ;;  %v646_v14 = vcombine.low %v624_v10, %v628_v11  ;;  %v595_v32 = vmul.f32 1.442695, %v594_v1 }
 0x3f6   : > { %v647_v18 = vcombine.low %v632_v12, %v636_v13  ;;  %v648_v19 = vcombine.low %v640_v15, %v644_v16 }
 0x3f7   : > { %v655_v20 = vrot.slane %v645_v17, %v1146_v34  ;;  %v662_v22 = vrot.slane %v646_v14, %v1146_v34  ;;  %1011 = vpow2.f32 %v595_v32 }
 0x3f8   : > { %v669_v23 = vrot.slane %v647_v18, %v1146_v34  ;;  %v676_v24 = vrot.slane %v648_v19, %v1146_v34 }
 0x3f9   : > { %v677_v33 = vcombine.low %v655_v20, %v662_v22 }
 0x3fa   : > { %v678_v26 = vcombine.low %v669_v23, %v676_v24 }
 0x3fb   : > { %v685_v27 = vrot.slane %v677_v33, %v1146_v34 }
 0x3fc   : > { %v692_v28 = vrot.slane %v678_v26, %v1146_v34 }
 0x3fe   : > { %v693_v29 = vcombine.low %v685_v27, %v692_v28 }
 0x400   : > { %695 = vperm.xlu1 %1008, %v693_v29  }
 0x401   : > { %v1012_v37 = vpop.eup %1011 }
 0x402   : > { %v608_v40 = vmul.f32 %v1012_v37, %v607_v38  ;;  %v722_v44 = vrot.slane %v1012_v37, %v1136_v25 }
 0x437   : > { %v797_v30 = vpop.f32.mrb[2].mxu1 }
 0x438   : > { %v970_v31 = vpop.f32.mrb[3].mxu1 }
 0x47f   : > { %v696_v35 = vpop.permute.xlu1 %695 }
 0x480   : > { %v700_v36 = vrot.slane %v696_v35, %v1133_v21 }
 0x482   : > { %v707_v39 = vrot.slane %v700_v36, %v1146_v34 }
 0x484   : > { %v714_v41 = vrot.slane %v707_v39, %v1146_v34 }
 0x486   : > { %v716_v42 = vadd.f32 %v714_v41, %v608_v40 }
 0x488   : > { %718 = vst.msk [vmem:[#allocation3] sm:$0x1] %vm318_vm3, %v716_v42 }
 0x48f   : > { %v938_v43 = vld [vmem:[#allocation3] ss:$0 sm:$0xff] }
 0x490   : > { %814 = vbcast.lane.b32.xlu0 %v938_v43, 256 }
 0x494   : > { %724 = vbcast.lane.b32.xlu0 %v722_v44, 256 }
 0x502   : > { %v815_v45 = vpop.permute.xlu0 %814 }
 0x503   : > { %1013 = vrcp.f32 %v815_v45 }
 0x506   : > { %v725_v46 = vpop.permute.xlu0 %724 }
 0x507   : > { %v727_v21 = vmul.f32 0.0, %v725_v46 }
 0x509   : > { %v801_v47 = vadd.f32 %v797_v30, %v727_v21 }
 0x50d   : > { %v1014_v48 = vpop.eup %1013 }
 0x50e   : > { %v817_v49 = vmul.f32 %v1014_v48, %v801_v47 }
 0x510   : > { %818 = vst [vmem:[%s313_s22] sm:$0xff] %v817_v49 }
 0x511 PF: > { %s15_s20 = sadd.s32 1, %s1037_s20   ;;  %s1201_s18 = smov %s1033_s19 }
 0x512   : > { %p12_p5 = scmp.ge.s32.totalorder %s15_s20, 4   ;;  %s1202_s19 = smov %s1204_s21 }
 0x514   :  { %14 = sbr.rel (!%p12_p5) target bundleno = 2 (0x2), region = 84 }

</bundles_post_ra>
